<compile_context>
chip_gen: v7x
topology: tpu7x:2x2x1
jax: 0.10.0
libtpu: 0.0.40
codegen_flags: <defaults>
</compile_context>

<pallas_src>
import functools

import jax
import jax.numpy as jnp
from jax.experimental import pallas as pl
from jax.experimental.pallas import tpu as pltpu

INPUT_SIZE = 28
HIDDEN = 64
OUT = 10
SUBLANE = 8  # f32 sublane tile floor


def _lstm_kernel(x_ref, w_ih_ref, w_hh_ref, b_ref, w_out_ref, b_out_ref,
                 out_ref, gx_scr, h_scr, c_scr, *, seq_len, batch_pad):
    H = HIDDEN
    T = seq_len
    BP = batch_pad

    # Phase 1: input projection for ALL timesteps in one MXU matmul.
    #   x_ref: (T*BP, I) @ (I, 4H) -> (T*BP, 4H); combined bias added once
    #   (no per-step broadcast inside the loop).
    gx_scr[...] = (
        jnp.dot(x_ref[...], w_ih_ref[...], preferred_element_type=jnp.float32)
        + b_ref[...]
    )

    h_scr[...] = jnp.zeros_like(h_scr)
    c_scr[...] = jnp.zeros_like(c_scr)

    # Phase 2: serial recurrence over time, fully in-kernel.  Only the
    # h @ W_hh^T matmul + element-wise gate math remain per step.
    def step(t, carry):
        gates = gx_scr[pl.ds(t * BP, BP), :] + jnp.dot(
            h_scr[...], w_hh_ref[...], preferred_element_type=jnp.float32)
        # PyTorch LSTM gate order: [i, f, g, o]
        i_g = jax.nn.sigmoid(gates[:, 0 * H:1 * H])
        f_g = jax.nn.sigmoid(gates[:, 1 * H:2 * H])
        g_g = jnp.tanh(gates[:, 2 * H:3 * H])
        o_g = jax.nn.sigmoid(gates[:, 3 * H:4 * H])
        c_new = f_g * c_scr[...] + i_g * g_g
        h_new = o_g * jnp.tanh(c_new)
        c_scr[...] = c_new
        h_scr[...] = h_new
        return carry

    # Short fixed trip-count -> fully unroll for LLO scheduler visibility.
    jax.lax.fori_loop(0, T, step, 0, unroll=True)

    # Phase 3: classifier head on the last hidden state, fused in-kernel.
    out_ref[...] = (
        jnp.dot(h_scr[...], w_out_ref[...], preferred_element_type=jnp.float32)
        + b_out_ref[...]
    ).astype(out_ref.dtype)


@jax.jit
def rnn_forward(x, w_ih, w_hh, b_ih, b_hh, w_out, b_out):
    """x: (B, T, INPUT_SIZE) float32 (batch_first, like PyTorch).

    w_ih: (4H, I), w_hh: (4H, H), b_ih/b_hh: (4H,)  -- PyTorch LSTM layout.
    w_out: (OUT, H), b_out: (OUT,)                  -- PyTorch Linear layout.
    Returns logits (B, OUT).
    """
    B, T, I = x.shape
    H = HIDDEN
    BP = max(SUBLANE, ((B + SUBLANE - 1) // SUBLANE) * SUBLANE)

    # Layout plumbing (tiny, single XLA pass): time-major, batch padded to the
    # sublane floor, flattened so each time step is a contiguous aligned
    # (BP, 4H) row window of the precomputed gate slab.
    x_tm = jnp.transpose(x, (1, 0, 2)).astype(jnp.float32)       # (T, B, I)
    x_tm = jnp.pad(x_tm, ((0, 0), (0, BP - B), (0, 0)))          # (T, BP, I)
    x2d = x_tm.reshape(T * BP, I)                                # (T*BP, I)

    # Pre-transpose weights for (rows, K) @ (K, N) MXU form.
    w_ih_t = jnp.transpose(w_ih).astype(jnp.float32)             # (I, 4H)
    w_hh_t = jnp.transpose(w_hh).astype(jnp.float32)             # (H, 4H)
    b = (b_ih + b_hh).reshape(1, 4 * H).astype(jnp.float32)      # (1, 4H)
    w_out_t = jnp.transpose(w_out).astype(jnp.float32)           # (H, OUT)
    b_o = b_out.reshape(1, OUT).astype(jnp.float32)              # (1, OUT)

    kernel = functools.partial(_lstm_kernel, seq_len=T, batch_pad=BP)
    vmem = lambda: pl.BlockSpec(memory_space=pltpu.MemorySpace.VMEM)

    out_padded = pl.pallas_call(
        kernel,
        out_shape=jax.ShapeDtypeStruct((BP, OUT), jnp.float32),
        in_specs=[vmem() for _ in range(6)],      # everything loaded to VMEM once
        out_specs=vmem(),
        scratch_shapes=[
            pltpu.VMEM((T * BP, 4 * H), jnp.float32),  # precomputed x-gates
            pltpu.VMEM((BP, H), jnp.float32),          # h
            pltpu.VMEM((BP, H), jnp.float32),          # c
        ],
    )(x2d, w_ih_t, w_hh_t, b, w_out_t, b_o)

    return out_padded[:B]


def _init_params(key):
    """Deterministic init mimicking PyTorch defaults (U(-1/sqrt(H), 1/sqrt(H)))."""
    H, I = HIDDEN, INPUT_SIZE
    k = 1.0 / jnp.sqrt(jnp.float32(H))
    ks = jax.random.split(key, 6)
    w_ih = jax.random.uniform(ks[0], (4 * H, I), jnp.float32, -k, k)
    w_hh = jax.random.uniform(ks[1], (4 * H, H), jnp.float32, -k, k)
    b_ih = jax.random.uniform(ks[2], (4 * H,), jnp.float32, -k, k)
    b_hh = jax.random.uniform(ks[3], (4 * H,), jnp.float32, -k, k)
    w_out = jax.random.uniform(ks[4], (OUT, H), jnp.float32, -k, k)
    b_out = jax.random.uniform(ks[5], (OUT,), jnp.float32, -k, k)
    return w_ih, w_hh, b_ih, b_hh, w_out, b_out


def _reference(x, w_ih, w_hh, b_ih, b_hh, w_out, b_out):
    """Pure-JAX reference of the same forward pass (sanity check)."""
    B, T, I = x.shape
    H = HIDDEN
    h = jnp.zeros((B, H), jnp.float32)
    c = jnp.zeros((B, H), jnp.float32)

    def step(carry, x_t):
        h, c = carry
        g = x_t @ w_ih.T + h @ w_hh.T + b_ih + b_hh
        i = jax.nn.sigmoid(g[:, 0 * H:1 * H])
        f = jax.nn.sigmoid(g[:, 1 * H:2 * H])
        gg = jnp.tanh(g[:, 2 * H:3 * H])
        o = jax.nn.sigmoid(g[:, 3 * H:4 * H])
        c = f * c + i * gg
        h = o * jnp.tanh(c)
        return (h, c), None

    (h, c), _ = jax.lax.scan(step, (h, c), jnp.transpose(x, (1, 0, 2)))
    return h @ w_out.T + b_out


if __name__ == "__main__":
    key = jax.random.PRNGKey(0)
    k_x, k_p = jax.random.split(key)

    B, T = 2, 8
    x = jax.random.normal(k_x, (B, T, INPUT_SIZE), jnp.float32)
    params = _init_params(k_p)

    out = jax.block_until_ready(rnn_forward(x, *params))

    ref = _reference(x, *params)
    assert out.shape == (B, OUT)
    assert jnp.allclose(out, ref, atol=1e-4, rtol=1e-4), (out, ref)

    print("KERNEL_OK")
</pallas_src>

<mosaic_0001>
module attributes {stable_mosaic.version = 11 : i64} {
  func.func @_lstm_kernel(%arg0: memref<64x28xf32, #tpu.memory_space<vmem>>, %arg1: memref<28x256xf32, #tpu.memory_space<vmem>>, %arg2: memref<64x256xf32, #tpu.memory_space<vmem>>, %arg3: memref<1x256xf32, #tpu.memory_space<vmem>>, %arg4: memref<64x10xf32, #tpu.memory_space<vmem>>, %arg5: memref<1x10xf32, #tpu.memory_space<vmem>>, %arg6: memref<8x10xf32, #tpu.memory_space<vmem>>, %arg7: memref<64x256xf32, #tpu.memory_space<vmem>>, %arg8: memref<8x64xf32, #tpu.memory_space<vmem>>, %arg9: memref<8x64xf32, #tpu.memory_space<vmem>>) attributes {dimension_semantics = [], scalar_prefetch = 0 : i64, scratch_operands = 3 : i64, tpu.core_type = #tpu.core_type<tc>} {
    %c0 = arith.constant 0 : index
    %c0_0 = arith.constant 0 : index
    %0 = vector.load %arg0[%c0, %c0_0] : memref<64x28xf32, #tpu.memory_space<vmem>>, vector<64x28xf32>
    %c0_1 = arith.constant 0 : index
    %c0_2 = arith.constant 0 : index
    %1 = vector.load %arg1[%c0_1, %c0_2] : memref<28x256xf32, #tpu.memory_space<vmem>>, vector<28x256xf32>
    %cst = arith.constant dense<0.000000e+00> : vector<64x256xf32>
    %2 = tpu.matmul %0, %1, %cst {dimension_numbers = #tpu.dot_dimension_numbers<[1], [0], [0], [1], [0, 0, 1, 1], [], []>} : vector<64x28xf32>, vector<28x256xf32>, vector<64x256xf32> -> vector<64x256xf32>
    %c0_3 = arith.constant 0 : index
    %c0_4 = arith.constant 0 : index
    %3 = vector.load %arg3[%c0_3, %c0_4] : memref<1x256xf32, #tpu.memory_space<vmem>>, vector<1x256xf32>
    %4 = vector.broadcast %3 : vector<1x256xf32> to vector<64x256xf32>
    %5 = arith.addf %2, %4 : vector<64x256xf32>
    %c0_5 = arith.constant 0 : index
    %c0_6 = arith.constant 0 : index
    %6 = vector.load %arg7[%c0_5, %c0_6] : memref<64x256xf32, #tpu.memory_space<vmem>>, vector<64x256xf32>
    tpu.vector_store %arg7[%c0_5, %c0_6], %5 {strides = array<i32>} : memref<64x256xf32, #tpu.memory_space<vmem>>, vector<64x256xf32>,
    %cst_7 = arith.constant 0.000000e+00 : f32
    %7 = vector.broadcast %cst_7 : f32 to vector<8x64xf32>
    %c0_8 = arith.constant 0 : index
    %c0_9 = arith.constant 0 : index
    %8 = vector.load %arg8[%c0_8, %c0_9] : memref<8x64xf32, #tpu.memory_space<vmem>>, vector<8x64xf32>
    tpu.vector_store %arg8[%c0_8, %c0_9], %7 {strides = array<i32>} : memref<8x64xf32, #tpu.memory_space<vmem>>, vector<8x64xf32>,
    %cst_10 = arith.constant 0.000000e+00 : f32
    %9 = vector.broadcast %cst_10 : f32 to vector<8x64xf32>
    %c0_11 = arith.constant 0 : index
    %c0_12 = arith.constant 0 : index
    %10 = vector.load %arg9[%c0_11, %c0_12] : memref<8x64xf32, #tpu.memory_space<vmem>>, vector<8x64xf32>
    tpu.vector_store %arg9[%c0_11, %c0_12], %9 {strides = array<i32>} : memref<8x64xf32, #tpu.memory_space<vmem>>, vector<8x64xf32>,
    %c0_i32 = arith.constant 0 : i32
    %c8_i32 = arith.constant 8 : i32
    %11 = arith.muli %c0_i32, %c8_i32 : i32
    %12 = arith.index_cast %11 : i32 to index
    %c0_13 = arith.constant 0 : index
    %13 = vector.load %arg7[%12, %c0_13] : memref<64x256xf32, #tpu.memory_space<vmem>>, vector<8x256xf32>
    %c0_14 = arith.constant 0 : index
    %c0_15 = arith.constant 0 : index
    %14 = vector.load %arg8[%c0_14, %c0_15] : memref<8x64xf32, #tpu.memory_space<vmem>>, vector<8x64xf32>
    %c0_16 = arith.constant 0 : index
    %c0_17 = arith.constant 0 : index
    %15 = vector.load %arg2[%c0_16, %c0_17] : memref<64x256xf32, #tpu.memory_space<vmem>>, vector<64x256xf32>
    %cst_18 = arith.constant dense<0.000000e+00> : vector<8x256xf32>
    %16 = tpu.matmul %14, %15, %cst_18 {dimension_numbers = #tpu.dot_dimension_numbers<[1], [0], [0], [1], [0, 0, 1, 1], [], []>} : vector<8x64xf32>, vector<64x256xf32>, vector<8x256xf32> -> vector<8x256xf32>
    %17 = arith.addf %13, %16 : vector<8x256xf32>
    %18 = vector.extract_strided_slice %17 {offsets = [0, 0], sizes = [8, 64], strides = [1, 1]} : vector<8x256xf32> to vector<8x64xf32>
    %19 = arith.negf %18 : vector<8x64xf32>
    %20 = math.exp %19 : vector<8x64xf32>
    %cst_19 = arith.constant 1.000000e+00 : f32
    %21 = vector.broadcast %cst_19 : f32 to vector<8x64xf32>
    %22 = arith.addf %21, %20 : vector<8x64xf32>
    %23 = arith.divf %21, %22 : vector<8x64xf32>
    %24 = vector.extract_strided_slice %17 {offsets = [0, 64], sizes = [8, 64], strides = [1, 1]} : vector<8x256xf32> to vector<8x64xf32>
    %25 = arith.negf %24 : vector<8x64xf32>
    %26 = math.exp %25 : vector<8x64xf32>
    %cst_20 = arith.constant 1.000000e+00 : f32
    %27 = vector.broadcast %cst_20 : f32 to vector<8x64xf32>
    %28 = arith.addf %27, %26 : vector<8x64xf32>
    %29 = arith.divf %27, %28 : vector<8x64xf32>
    %30 = vector.extract_strided_slice %17 {offsets = [0, 128], sizes = [8, 64], strides = [1, 1]} : vector<8x256xf32> to vector<8x64xf32>
    %31 = math.tanh %30 : vector<8x64xf32>
    %32 = vector.extract_strided_slice %17 {offsets = [0, 192], sizes = [8, 64], strides = [1, 1]} : vector<8x256xf32> to vector<8x64xf32>
    %33 = arith.negf %32 : vector<8x64xf32>
    %34 = math.exp %33 : vector<8x64xf32>
    %cst_21 = arith.constant 1.000000e+00 : f32
    %35 = vector.broadcast %cst_21 : f32 to vector<8x64xf32>
    %36 = arith.addf %35, %34 : vector<8x64xf32>
    %37 = arith.divf %35, %36 : vector<8x64xf32>
    %c0_22 = arith.constant 0 : index
    %c0_23 = arith.constant 0 : index
    %38 = vector.load %arg9[%c0_22, %c0_23] : memref<8x64xf32, #tpu.memory_space<vmem>>, vector<8x64xf32>
    %39 = arith.mulf %29, %38 : vector<8x64xf32>
    %40 = arith.mulf %23, %31 : vector<8x64xf32>
    %41 = arith.addf %39, %40 : vector<8x64xf32>
    %42 = math.tanh %41 : vector<8x64xf32>
    %43 = arith.mulf %37, %42 : vector<8x64xf32>
    %c0_24 = arith.constant 0 : index
    %c0_25 = arith.constant 0 : index
    %44 = vector.load %arg9[%c0_24, %c0_25] : memref<8x64xf32, #tpu.memory_space<vmem>>, vector<8x64xf32>
    tpu.vector_store %arg9[%c0_24, %c0_25], %41 {strides = array<i32>} : memref<8x64xf32, #tpu.memory_space<vmem>>, vector<8x64xf32>,
    %c0_26 = arith.constant 0 : index
    %c0_27 = arith.constant 0 : index
    %45 = vector.load %arg8[%c0_26, %c0_27] : memref<8x64xf32, #tpu.memory_space<vmem>>, vector<8x64xf32>
    tpu.vector_store %arg8[%c0_26, %c0_27], %43 {strides = array<i32>} : memref<8x64xf32, #tpu.memory_space<vmem>>, vector<8x64xf32>,
    %c1_i32 = arith.constant 1 : i32
    %c8_i32_28 = arith.constant 8 : i32
    %46 = arith.muli %c1_i32, %c8_i32_28 : i32
    %47 = arith.index_cast %46 : i32 to index
    %c0_29 = arith.constant 0 : index
    %48 = vector.load %arg7[%47, %c0_29] : memref<64x256xf32, #tpu.memory_space<vmem>>, vector<8x256xf32>
    %c0_30 = arith.constant 0 : index
    %c0_31 = arith.constant 0 : index
    %49 = vector.load %arg8[%c0_30, %c0_31] : memref<8x64xf32, #tpu.memory_space<vmem>>, vector<8x64xf32>
    %c0_32 = arith.constant 0 : index
    %c0_33 = arith.constant 0 : index
    %50 = vector.load %arg2[%c0_32, %c0_33] : memref<64x256xf32, #tpu.memory_space<vmem>>, vector<64x256xf32>
    %cst_34 = arith.constant dense<0.000000e+00> : vector<8x256xf32>
    %51 = tpu.matmul %49, %50, %cst_34 {dimension_numbers = #tpu.dot_dimension_numbers<[1], [0], [0], [1], [0, 0, 1, 1], [], []>} : vector<8x64xf32>, vector<64x256xf32>, vector<8x256xf32> -> vector<8x256xf32>
    %52 = arith.addf %48, %51 : vector<8x256xf32>
    %53 = vector.extract_strided_slice %52 {offsets = [0, 0], sizes = [8, 64], strides = [1, 1]} : vector<8x256xf32> to vector<8x64xf32>
    %54 = arith.negf %53 : vector<8x64xf32>
    %55 = math.exp %54 : vector<8x64xf32>
    %cst_35 = arith.constant 1.000000e+00 : f32
    %56 = vector.broadcast %cst_35 : f32 to vector<8x64xf32>
    %57 = arith.addf %56, %55 : vector<8x64xf32>
    %58 = arith.divf %56, %57 : vector<8x64xf32>
    %59 = vector.extract_strided_slice %52 {offsets = [0, 64], sizes = [8, 64], strides = [1, 1]} : vector<8x256xf32> to vector<8x64xf32>
    %60 = arith.negf %59 : vector<8x64xf32>
    %61 = math.exp %60 : vector<8x64xf32>
    %cst_36 = arith.constant 1.000000e+00 : f32
    %62 = vector.broadcast %cst_36 : f32 to vector<8x64xf32>
    %63 = arith.addf %62, %61 : vector<8x64xf32>
    %64 = arith.divf %62, %63 : vector<8x64xf32>
    %65 = vector.extract_strided_slice %52 {offsets = [0, 128], sizes = [8, 64], strides = [1, 1]} : vector<8x256xf32> to vector<8x64xf32>
    %66 = math.tanh %65 : vector<8x64xf32>
    %67 = vector.extract_strided_slice %52 {offsets = [0, 192], sizes = [8, 64], strides = [1, 1]} : vector<8x256xf32> to vector<8x64xf32>
    %68 = arith.negf %67 : vector<8x64xf32>
    %69 = math.exp %68 : vector<8x64xf32>
    %cst_37 = arith.constant 1.000000e+00 : f32
    %70 = vector.broadcast %cst_37 : f32 to vector<8x64xf32>
    %71 = arith.addf %70, %69 : vector<8x64xf32>
    %72 = arith.divf %70, %71 : vector<8x64xf32>
    %c0_38 = arith.constant 0 : index
    %c0_39 = arith.constant 0 : index
    %73 = vector.load %arg9[%c0_38, %c0_39] : memref<8x64xf32, #tpu.memory_space<vmem>>, vector<8x64xf32>
    %74 = arith.mulf %64, %73 : vector<8x64xf32>
    %75 = arith.mulf %58, %66 : vector<8x64xf32>
    %76 = arith.addf %74, %75 : vector<8x64xf32>
    %77 = math.tanh %76 : vector<8x64xf32>
    %78 = arith.mulf %72, %77 : vector<8x64xf32>
    %c0_40 = arith.constant 0 : index
    %c0_41 = arith.constant 0 : index
    %79 = vector.load %arg9[%c0_40, %c0_41] : memref<8x64xf32, #tpu.memory_space<vmem>>, vector<8x64xf32>
    tpu.vector_store %arg9[%c0_40, %c0_41], %76 {strides = array<i32>} : memref<8x64xf32, #tpu.memory_space<vmem>>, vector<8x64xf32>,
    %c0_42 = arith.constant 0 : index
    %c0_43 = arith.constant 0 : index
    %80 = vector.load %arg8[%c0_42, %c0_43] : memref<8x64xf32, #tpu.memory_space<vmem>>, vector<8x64xf32>
    tpu.vector_store %arg8[%c0_42, %c0_43], %78 {strides = array<i32>} : memref<8x64xf32, #tpu.memory_space<vmem>>, vector<8x64xf32>,
    %c2_i32 = arith.constant 2 : i32
    %c8_i32_44 = arith.constant 8 : i32
    %81 = arith.muli %c2_i32, %c8_i32_44 : i32
    %82 = arith.index_cast %81 : i32 to index
    %c0_45 = arith.constant 0 : index
    %83 = vector.load %arg7[%82, %c0_45] : memref<64x256xf32, #tpu.memory_space<vmem>>, vector<8x256xf32>
    %c0_46 = arith.constant 0 : index
    %c0_47 = arith.constant 0 : index
    %84 = vector.load %arg8[%c0_46, %c0_47] : memref<8x64xf32, #tpu.memory_space<vmem>>, vector<8x64xf32>
    %c0_48 = arith.constant 0 : index
    %c0_49 = arith.constant 0 : index
    %85 = vector.load %arg2[%c0_48, %c0_49] : memref<64x256xf32, #tpu.memory_space<vmem>>, vector<64x256xf32>
    %cst_50 = arith.constant dense<0.000000e+00> : vector<8x256xf32>
    %86 = tpu.matmul %84, %85, %cst_50 {dimension_numbers = #tpu.dot_dimension_numbers<[1], [0], [0], [1], [0, 0, 1, 1], [], []>} : vector<8x64xf32>, vector<64x256xf32>, vector<8x256xf32> -> vector<8x256xf32>
    %87 = arith.addf %83, %86 : vector<8x256xf32>
    %88 = vector.extract_strided_slice %87 {offsets = [0, 0], sizes = [8, 64], strides = [1, 1]} : vector<8x256xf32> to vector<8x64xf32>
    %89 = arith.negf %88 : vector<8x64xf32>
    %90 = math.exp %89 : vector<8x64xf32>
    %cst_51 = arith.constant 1.000000e+00 : f32
    %91 = vector.broadcast %cst_51 : f32 to vector<8x64xf32>
    %92 = arith.addf %91, %90 : vector<8x64xf32>
    %93 = arith.divf %91, %92 : vector<8x64xf32>
    %94 = vector.extract_strided_slice %87 {offsets = [0, 64], sizes = [8, 64], strides = [1, 1]} : vector<8x256xf32> to vector<8x64xf32>
    %95 = arith.negf %94 : vector<8x64xf32>
    %96 = math.exp %95 : vector<8x64xf32>
    %cst_52 = arith.constant 1.000000e+00 : f32
    %97 = vector.broadcast %cst_52 : f32 to vector<8x64xf32>
    %98 = arith.addf %97, %96 : vector<8x64xf32>
    %99 = arith.divf %97, %98 : vector<8x64xf32>
    %100 = vector.extract_strided_slice %87 {offsets = [0, 128], sizes = [8, 64], strides = [1, 1]} : vector<8x256xf32> to vector<8x64xf32>
    %101 = math.tanh %100 : vector<8x64xf32>
    %102 = vector.extract_strided_slice %87 {offsets = [0, 192], sizes = [8, 64], strides = [1, 1]} : vector<8x256xf32> to vector<8x64xf32>
    %103 = arith.negf %102 : vector<8x64xf32>
    %104 = math.exp %103 : vector<8x64xf32>
    %cst_53 = arith.constant 1.000000e+00 : f32
    %105 = vector.broadcast %cst_53 : f32 to vector<8x64xf32>
    %106 = arith.addf %105, %104 : vector<8x64xf32>
    %107 = arith.divf %105, %106 : vector<8x64xf32>
    %c0_54 = arith.constant 0 : index
    %c0_55 = arith.constant 0 : index
    %108 = vector.load %arg9[%c0_54, %c0_55] : memref<8x64xf32, #tpu.memory_space<vmem>>, vector<8x64xf32>
    %109 = arith.mulf %99, %108 : vector<8x64xf32>
    %110 = arith.mulf %93, %101 : vector<8x64xf32>
    %111 = arith.addf %109, %110 : vector<8x64xf32>
    %112 = math.tanh %111 : vector<8x64xf32>
    %113 = arith.mulf %107, %112 : vector<8x64xf32>
    %c0_56 = arith.constant 0 : index
    %c0_57 = arith.constant 0 : index
    %114 = vector.load %arg9[%c0_56, %c0_57] : memref<8x64xf32, #tpu.memory_space<vmem>>, vector<8x64xf32>
    tpu.vector_store %arg9[%c0_56, %c0_57], %111 {strides = array<i32>} : memref<8x64xf32, #tpu.memory_space<vmem>>, vector<8x64xf32>,
    %c0_58 = arith.constant 0 : index
    %c0_59 = arith.constant 0 : index
    %115 = vector.load %arg8[%c0_58, %c0_59] : memref<8x64xf32, #tpu.memory_space<vmem>>, vector<8x64xf32>
    tpu.vector_store %arg8[%c0_58, %c0_59], %113 {strides = array<i32>} : memref<8x64xf32, #tpu.memory_space<vmem>>, vector<8x64xf32>,
    %c3_i32 = arith.constant 3 : i32
    %c8_i32_60 = arith.constant 8 : i32
    %116 = arith.muli %c3_i32, %c8_i32_60 : i32
    %117 = arith.index_cast %116 : i32 to index
    %c0_61 = arith.constant 0 : index
    %118 = vector.load %arg7[%117, %c0_61] : memref<64x256xf32, #tpu.memory_space<vmem>>, vector<8x256xf32>
    %c0_62 = arith.constant 0 : index
    %c0_63 = arith.constant 0 : index
    %119 = vector.load %arg8[%c0_62, %c0_63] : memref<8x64xf32, #tpu.memory_space<vmem>>, vector<8x64xf32>
    %c0_64 = arith.constant 0 : index
    %c0_65 = arith.constant 0 : index
    %120 = vector.load %arg2[%c0_64, %c0_65] : memref<64x256xf32, #tpu.memory_space<vmem>>, vector<64x256xf32>
    %cst_66 = arith.constant dense<0.000000e+00> : vector<8x256xf32>
    %121 = tpu.matmul %119, %120, %cst_66 {dimension_numbers = #tpu.dot_dimension_numbers<[1], [0], [0], [1], [0, 0, 1, 1], [], []>} : vector<8x64xf32>, vector<64x256xf32>, vector<8x256xf32> -> vector<8x256xf32>
    %122 = arith.addf %118, %121 : vector<8x256xf32>
    %123 = vector.extract_strided_slice %122 {offsets = [0, 0], sizes = [8, 64], strides = [1, 1]} : vector<8x256xf32> to vector<8x64xf32>
    %124 = arith.negf %123 : vector<8x64xf32>
    %125 = math.exp %124 : vector<8x64xf32>
    %cst_67 = arith.constant 1.000000e+00 : f32
    %126 = vector.broadcast %cst_67 : f32 to vector<8x64xf32>
    %127 = arith.addf %126, %125 : vector<8x64xf32>
    %128 = arith.divf %126, %127 : vector<8x64xf32>
    %129 = vector.extract_strided_slice %122 {offsets = [0, 64], sizes = [8, 64], strides = [1, 1]} : vector<8x256xf32> to vector<8x64xf32>
    %130 = arith.negf %129 : vector<8x64xf32>
    %131 = math.exp %130 : vector<8x64xf32>
    %cst_68 = arith.constant 1.000000e+00 : f32
    %132 = vector.broadcast %cst_68 : f32 to vector<8x64xf32>
    %133 = arith.addf %132, %131 : vector<8x64xf32>
    %134 = arith.divf %132, %133 : vector<8x64xf32>
    %135 = vector.extract_strided_slice %122 {offsets = [0, 128], sizes = [8, 64], strides = [1, 1]} : vector<8x256xf32> to vector<8x64xf32>
    %136 = math.tanh %135 : vector<8x64xf32>
    %137 = vector.extract_strided_slice %122 {offsets = [0, 192], sizes = [8, 64], strides = [1, 1]} : vector<8x256xf32> to vector<8x64xf32>
    %138 = arith.negf %137 : vector<8x64xf32>
    %139 = math.exp %138 : vector<8x64xf32>
    %cst_69 = arith.constant 1.000000e+00 : f32
    %140 = vector.broadcast %cst_69 : f32 to vector<8x64xf32>
    %141 = arith.addf %140, %139 : vector<8x64xf32>
    %142 = arith.divf %140, %141 : vector<8x64xf32>
    %c0_70 = arith.constant 0 : index
    %c0_71 = arith.constant 0 : index
    %143 = vector.load %arg9[%c0_70, %c0_71] : memref<8x64xf32, #tpu.memory_space<vmem>>, vector<8x64xf32>
    %144 = arith.mulf %134, %143 : vector<8x64xf32>
    %145 = arith.mulf %128, %136 : vector<8x64xf32>
    %146 = arith.addf %144, %145 : vector<8x64xf32>
    %147 = math.tanh %146 : vector<8x64xf32>
    %148 = arith.mulf %142, %147 : vector<8x64xf32>
    %c0_72 = arith.constant 0 : index
    %c0_73 = arith.constant 0 : index
    %149 = vector.load %arg9[%c0_72, %c0_73] : memref<8x64xf32, #tpu.memory_space<vmem>>, vector<8x64xf32>
    tpu.vector_store %arg9[%c0_72, %c0_73], %146 {strides = array<i32>} : memref<8x64xf32, #tpu.memory_space<vmem>>, vector<8x64xf32>,
    %c0_74 = arith.constant 0 : index
    %c0_75 = arith.constant 0 : index
    %150 = vector.load %arg8[%c0_74, %c0_75] : memref<8x64xf32, #tpu.memory_space<vmem>>, vector<8x64xf32>
    tpu.vector_store %arg8[%c0_74, %c0_75], %148 {strides = array<i32>} : memref<8x64xf32, #tpu.memory_space<vmem>>, vector<8x64xf32>,
    %c4_i32 = arith.constant 4 : i32
    %c8_i32_76 = arith.constant 8 : i32
    %151 = arith.muli %c4_i32, %c8_i32_76 : i32
    %152 = arith.index_cast %151 : i32 to index
    %c0_77 = arith.constant 0 : index
    %153 = vector.load %arg7[%152, %c0_77] : memref<64x256xf32, #tpu.memory_space<vmem>>, vector<8x256xf32>
    %c0_78 = arith.constant 0 : index
    %c0_79 = arith.constant 0 : index
    %154 = vector.load %arg8[%c0_78, %c0_79] : memref<8x64xf32, #tpu.memory_space<vmem>>, vector<8x64xf32>
    %c0_80 = arith.constant 0 : index
    %c0_81 = arith.constant 0 : index
    %155 = vector.load %arg2[%c0_80, %c0_81] : memref<64x256xf32, #tpu.memory_space<vmem>>, vector<64x256xf32>
    %cst_82 = arith.constant dense<0.000000e+00> : vector<8x256xf32>
    %156 = tpu.matmul %154, %155, %cst_82 {dimension_numbers = #tpu.dot_dimension_numbers<[1], [0], [0], [1], [0, 0, 1, 1], [], []>} : vector<8x64xf32>, vector<64x256xf32>, vector<8x256xf32> -> vector<8x256xf32>
    %157 = arith.addf %153, %156 : vector<8x256xf32>
    %158 = vector.extract_strided_slice %157 {offsets = [0, 0], sizes = [8, 64], strides = [1, 1]} : vector<8x256xf32> to vector<8x64xf32>
    %159 = arith.negf %158 : vector<8x64xf32>
    %160 = math.exp %159 : vector<8x64xf32>
    %cst_83 = arith.constant 1.000000e+00 : f32
    %161 = vector.broadcast %cst_83 : f32 to vector<8x64xf32>
    %162 = arith.addf %161, %160 : vector<8x64xf32>
    %163 = arith.divf %161, %162 : vector<8x64xf32>
    %164 = vector.extract_strided_slice %157 {offsets = [0, 64], sizes = [8, 64], strides = [1, 1]} : vector<8x256xf32> to vector<8x64xf32>
    %165 = arith.negf %164 : vector<8x64xf32>
    %166 = math.exp %165 : vector<8x64xf32>
    %cst_84 = arith.constant 1.000000e+00 : f32
    %167 = vector.broadcast %cst_84 : f32 to vector<8x64xf32>
    %168 = arith.addf %167, %166 : vector<8x64xf32>
    %169 = arith.divf %167, %168 : vector<8x64xf32>
    %170 = vector.extract_strided_slice %157 {offsets = [0, 128], sizes = [8, 64], strides = [1, 1]} : vector<8x256xf32> to vector<8x64xf32>
    %171 = math.tanh %170 : vector<8x64xf32>
    %172 = vector.extract_strided_slice %157 {offsets = [0, 192], sizes = [8, 64], strides = [1, 1]} : vector<8x256xf32> to vector<8x64xf32>
    %173 = arith.negf %172 : vector<8x64xf32>
    %174 = math.exp %173 : vector<8x64xf32>
    %cst_85 = arith.constant 1.000000e+00 : f32
    %175 = vector.broadcast %cst_85 : f32 to vector<8x64xf32>
    %176 = arith.addf %175, %174 : vector<8x64xf32>
    %177 = arith.divf %175, %176 : vector<8x64xf32>
    %c0_86 = arith.constant 0 : index
    %c0_87 = arith.constant 0 : index
    %178 = vector.load %arg9[%c0_86, %c0_87] : memref<8x64xf32, #tpu.memory_space<vmem>>, vector<8x64xf32>
    %179 = arith.mulf %169, %178 : vector<8x64xf32>
    %180 = arith.mulf %163, %171 : vector<8x64xf32>
    %181 = arith.addf %179, %180 : vector<8x64xf32>
    %182 = math.tanh %181 : vector<8x64xf32>
    %183 = arith.mulf %177, %182 : vector<8x64xf32>
    %c0_88 = arith.constant 0 : index
    %c0_89 = arith.constant 0 : index
    %184 = vector.load %arg9[%c0_88, %c0_89] : memref<8x64xf32, #tpu.memory_space<vmem>>, vector<8x64xf32>
    tpu.vector_store %arg9[%c0_88, %c0_89], %181 {strides = array<i32>} : memref<8x64xf32, #tpu.memory_space<vmem>>, vector<8x64xf32>,
    %c0_90 = arith.constant 0 : index
    %c0_91 = arith.constant 0 : index
    %185 = vector.load %arg8[%c0_90, %c0_91] : memref<8x64xf32, #tpu.memory_space<vmem>>, vector<8x64xf32>
    tpu.vector_store %arg8[%c0_90, %c0_91], %183 {strides = array<i32>} : memref<8x64xf32, #tpu.memory_space<vmem>>, vector<8x64xf32>,
    %c5_i32 = arith.constant 5 : i32
    %c8_i32_92 = arith.constant 8 : i32
    %186 = arith.muli %c5_i32, %c8_i32_92 : i32
    %187 = arith.index_cast %186 : i32 to index
    %c0_93 = arith.constant 0 : index
    %188 = vector.load %arg7[%187, %c0_93] : memref<64x256xf32, #tpu.memory_space<vmem>>, vector<8x256xf32>
    %c0_94 = arith.constant 0 : index
    %c0_95 = arith.constant 0 : index
    %189 = vector.load %arg8[%c0_94, %c0_95] : memref<8x64xf32, #tpu.memory_space<vmem>>, vector<8x64xf32>
    %c0_96 = arith.constant 0 : index
    %c0_97 = arith.constant 0 : index
    %190 = vector.load %arg2[%c0_96, %c0_97] : memref<64x256xf32, #tpu.memory_space<vmem>>, vector<64x256xf32>
    %cst_98 = arith.constant dense<0.000000e+00> : vector<8x256xf32>
    %191 = tpu.matmul %189, %190, %cst_98 {dimension_numbers = #tpu.dot_dimension_numbers<[1], [0], [0], [1], [0, 0, 1, 1], [], []>} : vector<8x64xf32>, vector<64x256xf32>, vector<8x256xf32> -> vector<8x256xf32>
    %192 = arith.addf %188, %191 : vector<8x256xf32>
    %193 = vector.extract_strided_slice %192 {offsets = [0, 0], sizes = [8, 64], strides = [1, 1]} : vector<8x256xf32> to vector<8x64xf32>
    %194 = arith.negf %193 : vector<8x64xf32>
    %195 = math.exp %194 : vector<8x64xf32>
    %cst_99 = arith.constant 1.000000e+00 : f32
    %196 = vector.broadcast %cst_99 : f32 to vector<8x64xf32>
    %197 = arith.addf %196, %195 : vector<8x64xf32>
    %198 = arith.divf %196, %197 : vector<8x64xf32>
    %199 = vector.extract_strided_slice %192 {offsets = [0, 64], sizes = [8, 64], strides = [1, 1]} : vector<8x256xf32> to vector<8x64xf32>
    %200 = arith.negf %199 : vector<8x64xf32>
    %201 = math.exp %200 : vector<8x64xf32>
    %cst_100 = arith.constant 1.000000e+00 : f32
    %202 = vector.broadcast %cst_100 : f32 to vector<8x64xf32>
    %203 = arith.addf %202, %201 : vector<8x64xf32>
    %204 = arith.divf %202, %203 : vector<8x64xf32>
    %205 = vector.extract_strided_slice %192 {offsets = [0, 128], sizes = [8, 64], strides = [1, 1]} : vector<8x256xf32> to vector<8x64xf32>
    %206 = math.tanh %205 : vector<8x64xf32>
    %207 = vector.extract_strided_slice %192 {offsets = [0, 192], sizes = [8, 64], strides = [1, 1]} : vector<8x256xf32> to vector<8x64xf32>
    %208 = arith.negf %207 : vector<8x64xf32>
    %209 = math.exp %208 : vector<8x64xf32>
    %cst_101 = arith.constant 1.000000e+00 : f32
    %210 = vector.broadcast %cst_101 : f32 to vector<8x64xf32>
    %211 = arith.addf %210, %209 : vector<8x64xf32>
    %212 = arith.divf %210, %211 : vector<8x64xf32>
    %c0_102 = arith.constant 0 : index
    %c0_103 = arith.constant 0 : index
    %213 = vector.load %arg9[%c0_102, %c0_103] : memref<8x64xf32, #tpu.memory_space<vmem>>, vector<8x64xf32>
    %214 = arith.mulf %204, %213 : vector<8x64xf32>
    %215 = arith.mulf %198, %206 : vector<8x64xf32>
    %216 = arith.addf %214, %215 : vector<8x64xf32>
    %217 = math.tanh %216 : vector<8x64xf32>
    %218 = arith.mulf %212, %217 : vector<8x64xf32>
    %c0_104 = arith.constant 0 : index
    %c0_105 = arith.constant 0 : index
    %219 = vector.load %arg9[%c0_104, %c0_105] : memref<8x64xf32, #tpu.memory_space<vmem>>, vector<8x64xf32>
    tpu.vector_store %arg9[%c0_104, %c0_105], %216 {strides = array<i32>} : memref<8x64xf32, #tpu.memory_space<vmem>>, vector<8x64xf32>,
    %c0_106 = arith.constant 0 : index
    %c0_107 = arith.constant 0 : index
    %220 = vector.load %arg8[%c0_106, %c0_107] : memref<8x64xf32, #tpu.memory_space<vmem>>, vector<8x64xf32>
    tpu.vector_store %arg8[%c0_106, %c0_107], %218 {strides = array<i32>} : memref<8x64xf32, #tpu.memory_space<vmem>>, vector<8x64xf32>,
    %c6_i32 = arith.constant 6 : i32
    %c8_i32_108 = arith.constant 8 : i32
    %221 = arith.muli %c6_i32, %c8_i32_108 : i32
    %222 = arith.index_cast %221 : i32 to index
    %c0_109 = arith.constant 0 : index
    %223 = vector.load %arg7[%222, %c0_109] : memref<64x256xf32, #tpu.memory_space<vmem>>, vector<8x256xf32>
    %c0_110 = arith.constant 0 : index
    %c0_111 = arith.constant 0 : index
    %224 = vector.load %arg8[%c0_110, %c0_111] : memref<8x64xf32, #tpu.memory_space<vmem>>, vector<8x64xf32>
    %c0_112 = arith.constant 0 : index
    %c0_113 = arith.constant 0 : index
    %225 = vector.load %arg2[%c0_112, %c0_113] : memref<64x256xf32, #tpu.memory_space<vmem>>, vector<64x256xf32>
    %cst_114 = arith.constant dense<0.000000e+00> : vector<8x256xf32>
    %226 = tpu.matmul %224, %225, %cst_114 {dimension_numbers = #tpu.dot_dimension_numbers<[1], [0], [0], [1], [0, 0, 1, 1], [], []>} : vector<8x64xf32>, vector<64x256xf32>, vector<8x256xf32> -> vector<8x256xf32>
    %227 = arith.addf %223, %226 : vector<8x256xf32>
    %228 = vector.extract_strided_slice %227 {offsets = [0, 0], sizes = [8, 64], strides = [1, 1]} : vector<8x256xf32> to vector<8x64xf32>
    %229 = arith.negf %228 : vector<8x64xf32>
    %230 = math.exp %229 : vector<8x64xf32>
    %cst_115 = arith.constant 1.000000e+00 : f32
    %231 = vector.broadcast %cst_115 : f32 to vector<8x64xf32>
    %232 = arith.addf %231, %230 : vector<8x64xf32>
    %233 = arith.divf %231, %232 : vector<8x64xf32>
    %234 = vector.extract_strided_slice %227 {offsets = [0, 64], sizes = [8, 64], strides = [1, 1]} : vector<8x256xf32> to vector<8x64xf32>
    %235 = arith.negf %234 : vector<8x64xf32>
    %236 = math.exp %235 : vector<8x64xf32>
    %cst_116 = arith.constant 1.000000e+00 : f32
    %237 = vector.broadcast %cst_116 : f32 to vector<8x64xf32>
    %238 = arith.addf %237, %236 : vector<8x64xf32>
    %239 = arith.divf %237, %238 : vector<8x64xf32>
    %240 = vector.extract_strided_slice %227 {offsets = [0, 128], sizes = [8, 64], strides = [1, 1]} : vector<8x256xf32> to vector<8x64xf32>
    %241 = math.tanh %240 : vector<8x64xf32>
    %242 = vector.extract_strided_slice %227 {offsets = [0, 192], sizes = [8, 64], strides = [1, 1]} : vector<8x256xf32> to vector<8x64xf32>
    %243 = arith.negf %242 : vector<8x64xf32>
    %244 = math.exp %243 : vector<8x64xf32>
    %cst_117 = arith.constant 1.000000e+00 : f32
    %245 = vector.broadcast %cst_117 : f32 to vector<8x64xf32>
    %246 = arith.addf %245, %244 : vector<8x64xf32>
    %247 = arith.divf %245, %246 : vector<8x64xf32>
    %c0_118 = arith.constant 0 : index
    %c0_119 = arith.constant 0 : index
    %248 = vector.load %arg9[%c0_118, %c0_119] : memref<8x64xf32, #tpu.memory_space<vmem>>, vector<8x64xf32>
    %249 = arith.mulf %239, %248 : vector<8x64xf32>
    %250 = arith.mulf %233, %241 : vector<8x64xf32>
    %251 = arith.addf %249, %250 : vector<8x64xf32>
    %252 = math.tanh %251 : vector<8x64xf32>
    %253 = arith.mulf %247, %252 : vector<8x64xf32>
    %c0_120 = arith.constant 0 : index
    %c0_121 = arith.constant 0 : index
    %254 = vector.load %arg9[%c0_120, %c0_121] : memref<8x64xf32, #tpu.memory_space<vmem>>, vector<8x64xf32>
    tpu.vector_store %arg9[%c0_120, %c0_121], %251 {strides = array<i32>} : memref<8x64xf32, #tpu.memory_space<vmem>>, vector<8x64xf32>,
    %c0_122 = arith.constant 0 : index
    %c0_123 = arith.constant 0 : index
    %255 = vector.load %arg8[%c0_122, %c0_123] : memref<8x64xf32, #tpu.memory_space<vmem>>, vector<8x64xf32>
    tpu.vector_store %arg8[%c0_122, %c0_123], %253 {strides = array<i32>} : memref<8x64xf32, #tpu.memory_space<vmem>>, vector<8x64xf32>,
    %c7_i32 = arith.constant 7 : i32
    %c8_i32_124 = arith.constant 8 : i32
    %256 = arith.muli %c7_i32, %c8_i32_124 : i32
    %257 = arith.index_cast %256 : i32 to index
    %c0_125 = arith.constant 0 : index
    %258 = vector.load %arg7[%257, %c0_125] : memref<64x256xf32, #tpu.memory_space<vmem>>, vector<8x256xf32>
    %c0_126 = arith.constant 0 : index
    %c0_127 = arith.constant 0 : index
    %259 = vector.load %arg8[%c0_126, %c0_127] : memref<8x64xf32, #tpu.memory_space<vmem>>, vector<8x64xf32>
    %c0_128 = arith.constant 0 : index
    %c0_129 = arith.constant 0 : index
    %260 = vector.load %arg2[%c0_128, %c0_129] : memref<64x256xf32, #tpu.memory_space<vmem>>, vector<64x256xf32>
    %cst_130 = arith.constant dense<0.000000e+00> : vector<8x256xf32>
    %261 = tpu.matmul %259, %260, %cst_130 {dimension_numbers = #tpu.dot_dimension_numbers<[1], [0], [0], [1], [0, 0, 1, 1], [], []>} : vector<8x64xf32>, vector<64x256xf32>, vector<8x256xf32> -> vector<8x256xf32>
    %262 = arith.addf %258, %261 : vector<8x256xf32>
    %263 = vector.extract_strided_slice %262 {offsets = [0, 0], sizes = [8, 64], strides = [1, 1]} : vector<8x256xf32> to vector<8x64xf32>
    %264 = arith.negf %263 : vector<8x64xf32>
    %265 = math.exp %264 : vector<8x64xf32>
    %cst_131 = arith.constant 1.000000e+00 : f32
    %266 = vector.broadcast %cst_131 : f32 to vector<8x64xf32>
    %267 = arith.addf %266, %265 : vector<8x64xf32>
    %268 = arith.divf %266, %267 : vector<8x64xf32>
    %269 = vector.extract_strided_slice %262 {offsets = [0, 64], sizes = [8, 64], strides = [1, 1]} : vector<8x256xf32> to vector<8x64xf32>
    %270 = arith.negf %269 : vector<8x64xf32>
    %271 = math.exp %270 : vector<8x64xf32>
    %cst_132 = arith.constant 1.000000e+00 : f32
    %272 = vector.broadcast %cst_132 : f32 to vector<8x64xf32>
    %273 = arith.addf %272, %271 : vector<8x64xf32>
    %274 = arith.divf %272, %273 : vector<8x64xf32>
    %275 = vector.extract_strided_slice %262 {offsets = [0, 128], sizes = [8, 64], strides = [1, 1]} : vector<8x256xf32> to vector<8x64xf32>
    %276 = math.tanh %275 : vector<8x64xf32>
    %277 = vector.extract_strided_slice %262 {offsets = [0, 192], sizes = [8, 64], strides = [1, 1]} : vector<8x256xf32> to vector<8x64xf32>
    %278 = arith.negf %277 : vector<8x64xf32>
    %279 = math.exp %278 : vector<8x64xf32>
    %cst_133 = arith.constant 1.000000e+00 : f32
    %280 = vector.broadcast %cst_133 : f32 to vector<8x64xf32>
    %281 = arith.addf %280, %279 : vector<8x64xf32>
    %282 = arith.divf %280, %281 : vector<8x64xf32>
    %c0_134 = arith.constant 0 : index
    %c0_135 = arith.constant 0 : index
    %283 = vector.load %arg9[%c0_134, %c0_135] : memref<8x64xf32, #tpu.memory_space<vmem>>, vector<8x64xf32>
    %284 = arith.mulf %274, %283 : vector<8x64xf32>
    %285 = arith.mulf %268, %276 : vector<8x64xf32>
    %286 = arith.addf %284, %285 : vector<8x64xf32>
    %287 = math.tanh %286 : vector<8x64xf32>
    %288 = arith.mulf %282, %287 : vector<8x64xf32>
    %c0_136 = arith.constant 0 : index
    %c0_137 = arith.constant 0 : index
    %289 = vector.load %arg9[%c0_136, %c0_137] : memref<8x64xf32, #tpu.memory_space<vmem>>, vector<8x64xf32>
    tpu.vector_store %arg9[%c0_136, %c0_137], %286 {strides = array<i32>} : memref<8x64xf32, #tpu.memory_space<vmem>>, vector<8x64xf32>,
    %c0_138 = arith.constant 0 : index
    %c0_139 = arith.constant 0 : index
    %290 = vector.load %arg8[%c0_138, %c0_139] : memref<8x64xf32, #tpu.memory_space<vmem>>, vector<8x64xf32>
    tpu.vector_store %arg8[%c0_138, %c0_139], %288 {strides = array<i32>} : memref<8x64xf32, #tpu.memory_space<vmem>>, vector<8x64xf32>,
    %c8_i32_140 = arith.constant 8 : i32
    %c0_141 = arith.constant 0 : index
    %c0_142 = arith.constant 0 : index
    %291 = vector.load %arg8[%c0_141, %c0_142] : memref<8x64xf32, #tpu.memory_space<vmem>>, vector<8x64xf32>
    %c0_143 = arith.constant 0 : index
    %c0_144 = arith.constant 0 : index
    %292 = vector.load %arg4[%c0_143, %c0_144] : memref<64x10xf32, #tpu.memory_space<vmem>>, vector<64x10xf32>
    %cst_145 = arith.constant dense<0.000000e+00> : vector<8x10xf32>
    %293 = tpu.matmul %291, %292, %cst_145 {dimension_numbers = #tpu.dot_dimension_numbers<[1], [0], [0], [1], [0, 0, 1, 1], [], []>} : vector<8x64xf32>, vector<64x10xf32>, vector<8x10xf32> -> vector<8x10xf32>
    %c0_146 = arith.constant 0 : index
    %c0_147 = arith.constant 0 : index
    %294 = vector.load %arg5[%c0_146, %c0_147] : memref<1x10xf32, #tpu.memory_space<vmem>>, vector<1x10xf32>
    %295 = vector.broadcast %294 : vector<1x10xf32> to vector<8x10xf32>
    %296 = arith.addf %293, %295 : vector<8x10xf32>
    %c0_148 = arith.constant 0 : index
    %c0_149 = arith.constant 0 : index
    %297 = vector.load %arg6[%c0_148, %c0_149] : memref<8x10xf32, #tpu.memory_space<vmem>>, vector<8x10xf32>
    tpu.vector_store %arg6[%c0_148, %c0_149], %296 {strides = array<i32>} : memref<8x10xf32, #tpu.memory_space<vmem>>, vector<8x10xf32>,
    return
  }
}

</mosaic_0001>

<bundles_post_ra>
// kernel: rnn_forward.1
= control target key start
LH: loop header
LB: loop body
LE: loop exit
PB: predicated region body
PF: predicated region fallthrough
CT: control target
= control target key end

     0   :  { %vm76_vm0 = vcmask 1043456   ;;  %v1713_v3 = vmov 0.0   ;;  %vm212_vm1 = vcmask 523264   ;;  %vm1714_vm2 = vmmov 1   ;;  %s1715_s20 = smov 64   ;;  %s2107_s1 = inlined_call_operand.vmem [shape: f32[28,256], index: 1, kind: input, shape index: {}]   ;;  %s2108_s2 = inlined_call_operand.vmem [shape: f32[64,256], index: 2, kind: input, shape index: {}]   ;;  %s2109_s0 = inlined_call_operand.vmem [shape: f32[64,28], index: 0, kind: input, shape index: {}]   ;;  %s2110_s3 = inlined_call_operand.vmem [shape: f32[1,256], index: 3, kind: input, shape index: {}]   ;;  %s2111_s4 = inlined_call_operand.vmem [shape: f32[64,10], index: 4, kind: input, shape index: {}]   ;;  %s2112_s5 = inlined_call_operand.vmem [shape: f32[1,10], index: 5, kind: input, shape index: {}]   ;;  %s2113_s6 = inlined_call_operand.vmem [shape: f32[8,10], index: 6, kind: output, shape index: {}]  }
   0x1   :  { %v32_v0 = vld [vmem:[%s2107_s1 + $0x8] sm:$0xff]  ;;  %v34_v1 = vld [vmem:[%s2107_s1 + $0x18] sm:$0xff]  ;;  %v31_v2 = vld [vmem:[%s2107_s1] sm:$0xff]  ;;  %147 = vmatprep.mubr.f32.mxu1 %v1713_v3  ;;  %697 = vmatprep.mubr.f32.mxu0 %v1713_v3  ;;  %213 = vst.msk [vmem:[#allocation3] sm:$0xff] %vm212_vm1, %v1713_v3  ;;  %vm51_vm4 = vcmask 228352   ;;  %v41_v52 = vlaneseq  ;;  %vm1717_vm5 = vmmov 0  }
   0x2   :  { %v1430_v4 = vpack.c.bf16 %v34_v1, %v32_v0  ;;  %v33_v5 = vld [vmem:[%s2107_s1 + $0x10] sm:$0xff]  ;;  %v36_v6 = vld [vmem:[%s2107_s1 + $0x28] sm:$0xff]  ;;  %v38_v7 = vld [vmem:[%s2107_s1 + $0x38] sm:$0xf]  ;;  %214 = vst.msk [vmem:[#allocation4] sm:$0xff] %vm212_vm1, %v1713_v3  ;;  %vm1360_vm6 = vcmask 80896  }
   0x3   :  { %v1432_v8 = vpack.c.bf16 %v33_v5, %v31_v2  ;;  %v1434_v9 = vpack.c.bf16 %v38_v7, %v36_v6  ;;  %vm1778_vm3 = vmpackc.low %vm76_vm0, %vm1714_vm2  ;;  %v35_v11 = vld [vmem:[%s2107_s1 + $0x20] sm:$0xff]  ;;  %v37_v12 = vld [vmem:[%s2107_s1 + $0x30] sm:$0xf]  ;;  %v42_v55 = vshrl.u32 %v41_v52, 7 }
   0x4   :  { %1431 = vmatprep.subr.bf16.mxu1 %v1430_v4  ;;  %v219_v13 = vld [vmem:[%s2108_s2 + $0x8] sm:$0xff]  ;;  %v221_v14 = vld [vmem:[%s2108_s2 + $0x18] sm:$0xff]  ;;  %v1437_v15 = vpack.c.bf16 %v37_v12, %v35_v11  ;;  %v218_v17 = vld [vmem:[%s2108_s2] sm:$0xff] }
   0x5   :  { %1433 = vmatpush1.bf16.msra.mxu1 %v1432_v8  ;;  %v1794_v16 = vpack.c.bf16 %v221_v14, %v219_v13  ;;  %v220_v18 = vld [vmem:[%s2108_s2 + $0x10] sm:$0xff]  ;;  %v223_v20 = vld [vmem:[%s2108_s2 + $0x28] sm:$0xff]  ;;  %v225_v21 = vld [vmem:[%s2108_s2 + $0x38] sm:$0xff]  ;;  %v43_v58 = vsub.s32 0, %v42_v55  ;;  %v47_v4 = vsub.s32 1, %v42_v55 }
   0x6   :  { %1436 = vmatprep.subr.msk.bf16.mxu1 %vm1778_vm3, %v1434_v9  ;;  %v1804_v19 = vpack.c.bf16 %v220_v18, %v218_v17  ;;  %v1812_v22 = vpack.c.bf16 %v225_v21, %v223_v20  ;;  %v222_v23 = vld [vmem:[%s2108_s2 + $0x20] sm:$0xff]  ;;  %v224_v24 = vld [vmem:[%s2108_s2 + $0x30] sm:$0xff]  ;;  %v227_v27 = vld [vmem:[%s2108_s2 + $0x48] sm:$0xff] }
   0x7   :  { %1489 = vmatprep.subr.bf16.mxu0 %v1794_v16  ;;  %v23_v25 = vld [vmem:[%s2109_s0] sm:$0xff]  ;;  %v1829_v26 = vpack.c.bf16 %v224_v24, %v222_v23  ;;  %v229_v28 = vld [vmem:[%s2108_s2 + $0x58] sm:$0xff]  ;;  %v228_v30 = vld [vmem:[%s2108_s2 + $0x50] sm:$0xff] }
   0x8   :  { %1491 = vmatpush1.bf16.msra.mxu0 %v1804_v19  ;;  %v226_v29 = vld [vmem:[%s2108_s2 + $0x40] sm:$0xff]  ;;  %v24_v32 = vld [vmem:[%s2109_s0 + $0x8] sm:$0xff]  ;;  %v1850_v33 = vpack.c.bf16 %v229_v28, %v227_v27  ;;  %v233_v35 = vld [vmem:[%s2108_s2 + $0x78] sm:$0xff] }
   0x9   :  { %1439 = vmatpush1.bf16.msk.msra.mxu1 %vm1778_vm3, %v1437_v15  ;;  %1493 = vmatprep.subr.bf16.mxu0 %v1812_v22  ;;  %v323_v31 = vld [vmem:[#allocation4] sm:$0xff]  ;;  %v1859_v36 = vpack.c.bf16 %v228_v30, %v226_v29  ;;  %v230_v37 = vld [vmem:[%s2108_s2 + $0x60] sm:$0xff]  ;;  %v232_v38 = vld [vmem:[%s2108_s2 + $0x70] sm:$0xff] }
   0xa   :  { %1441 = vmatprep.subr.bf16.mxu1 %v1794_v16  ;;  %v231_v34 = vld [vmem:[%s2108_s2 + $0x68] sm:$0xff]  ;;  %325 = vrot.lane.b32.xlu0 %v323_v31, %s1715_s20  ;;  %v25_v40 = vld [vmem:[%s2109_s0 + $0x10] sm:$0xff]  ;;  %v1879_v41 = vpack.c.bf16 %v232_v38, %v230_v37  ;;  %v26_v42 = vld [vmem:[%s2109_s0 + $0x18] sm:$0xff] }
   0xb   :  { %v1870_v39 = vpack.c.bf16 %v233_v35, %v231_v34  ;;  %v27_v43 = vld [vmem:[%s2109_s0 + $0x20] sm:$0xff]  ;;  %v28_v44 = vld [vmem:[%s2109_s0 + $0x28] sm:$0xff]  ;;  %v29_v45 = vld [vmem:[%s2109_s0 + $0x30] sm:$0xff] }
   0xc   :  { %1368 = vmatmul.mubr.msk.f32.vlgmr.msra.gmra.mrb[0].mxu1 %vm51_vm4, %v23_v25  ;;  %1495 = vmatpush1.bf16.msra.mxu0 %v1829_v26  ;;  %v30_v46 = vld [vmem:[%s2109_s0 + $0x38] sm:$0xff]  ;;  %v217_v47 = vld [vmem:[#allocation3] sm:$0xff] }
   0xd   :  { %1443 = vmatpush1.bf16.msra.mxu1 %v1804_v19  ;;  %153 = vmatprep.mubr.f32.mxu1 %v1713_v3  ;;  %v39_v59 = vld [vmem:[%s2110_s3] sm:$0x3] }
   0xe   :  { %1445 = vmatprep.subr.bf16.mxu1 %v1812_v22  ;;  %1497 = vmatprep.subr.bf16.mxu0 %v1850_v33  ;;  %v1948_v62 = vrot.slane %v39_v59, %v43_v58  ;;  %v1951_v5 = vrot.slane %v39_v59, %v47_v4 }
  0x10   :  { %1369 = vmatmul.mubr.msk.f32.gmra.mrb[2].mxu1 %vm51_vm4, %v24_v32  ;;  %1499 = vmatpush1.bf16.msra.mxu0 %v1859_v36 }
  0x11   :  { %159 = vmatprep.mubr.f32.mxu1 %v1713_v3  ;;  %1447 = vmatpush1.bf16.msra.mxu1 %v1829_v26 }
  0x12   :  { %1449 = vmatprep.subr.bf16.mxu1 %v1850_v33  ;;  %1501 = vmatprep.subr.bf16.mxu0 %v1870_v39 }
  0x14   :  { %1370 = vmatmul.mubr.msk.f32.gmra.mrb[4].mxu1 %vm51_vm4, %v25_v40  ;;  %1503 = vmatpush1.bf16.msra.mxu0 %v1879_v41 }
  0x15   :  { %165 = vmatprep.mubr.f32.mxu1 %v1713_v3  ;;  %1451 = vmatpush1.bf16.msra.mxu1 %v1859_v36 }
  0x16   :  { %1453 = vmatprep.subr.bf16.mxu1 %v1870_v39  ;;  %1505 = vmatprep.subr.bf16.mxu0 %v1794_v16 }
  0x18   :  { %1371 = vmatmul.mubr.msk.f32.gmra.mrb[6].mxu1 %vm51_vm4, %v26_v42 }
  0x19   :  { %171 = vmatprep.mubr.f32.mxu1 %v1713_v3  ;;  %1455 = vmatpush1.bf16.msra.mxu1 %v1879_v41 }
  0x1a   :  { %1457 = vmatprep.subr.bf16.mxu1 %v1794_v16 }
  0x1c   :  { %1372 = vmatmul.mubr.msk.f32.gmra.mrb[8].mxu1 %vm51_vm4, %v27_v43 }
  0x1d   :  { %177 = vmatprep.mubr.f32.mxu1 %v1713_v3 }
  0x20   :  { %1373 = vmatmul.mubr.msk.f32.gmra.mrb[10].mxu1 %vm51_vm4, %v28_v44 }
  0x21   :  { %183 = vmatprep.mubr.f32.mxu1 %v1713_v3 }
  0x24   :  { %1374 = vmatmul.mubr.msk.f32.gmra.mrb[12].mxu1 %vm51_vm4, %v29_v45 }
  0x25   :  { %189 = vmatprep.mubr.f32.mxu1 %v1713_v3 }
  0x28   :  { %1375 = vmatmul.mubr.msk.f32.gmra.mrb[14].mxu1 %vm51_vm4, %v30_v46 }
  0x29   :  { %301 = vmatprep.mubr.f32.mxu1 %v1713_v3 }
  0x2c   :  { %1376 = vmatmul.mubr.msk.f32.vlgmr.msra.gmra.mrb[0].mxu1 %vm212_vm1, %v217_v47 }
  0x2d   :  { %1459 = vmatpush1.bf16.msra.mxu1 %v1804_v19  ;;  %433 = vmatprep.mubr.f32.mxu1 %v1713_v3 }
  0x2e   :  { %1461 = vmatprep.subr.bf16.mxu1 %v1812_v22 }
  0x31   :  { %1463 = vmatpush1.bf16.msra.mxu1 %v1829_v26 }
  0x32   :  { %1465 = vmatprep.subr.bf16.mxu1 %v1850_v33 }
  0x35   :  { %1467 = vmatpush1.bf16.msra.mxu1 %v1859_v36 }
  0x36   :  { %1469 = vmatprep.subr.bf16.mxu1 %v1870_v39 }
  0x39   :  { %1471 = vmatpush1.bf16.msra.mxu1 %v1879_v41 }
  0x3a   :  { %1473 = vmatprep.subr.bf16.mxu1 %v1794_v16 }
  0x7c   :  { %v326_v14 = vpop.permute.xlu0 %325 }
  0xeb   :  { %v1925_v48 = vpop.f32.mrb[6].mxu1 }
  0xec   :  { %v1927_v49 = vpop.f32.mrb[7].mxu1 }
  0xef   :  { %v1929_v50 = vpop.f32.mrb[8].mxu1 }
  0xf0   :  { %v1931_v51 = vpop.f32.mrb[9].mxu1 }
  0xf3   :  { %v1933_v53 = vpop.f32.mrb[10].mxu1 }
  0xf4   :  { %v1935_v54 = vpop.f32.mrb[11].mxu1 }
  0xf7   :  { %v1937_v56 = vpop.f32.mrb[12].mxu1 }
  0xf8   :  { %v1939_v57 = vpop.f32.mrb[13].mxu1 }
  0xfb   :  { %v1944_v60 = vpop.f32.mrb[14].mxu1 }
  0xfc   :  { %v1946_v61 = vpop.f32.mrb[15].mxu1 }
  0xff   :  { %v303_v63 = vpop.f32.mrb[0].mxu1 }
 0x100   :  { %v1580_v0 = vadd.f32 %v303_v63, %v1948_v62  ;;  %v305_v1 = vpop.f32.mrb[1].mxu1 }
 0x101   :  { %v1581_v6 = vadd.f32 %v305_v1, %v1951_v5 }
 0x102   :  { %v1377_v2 = vmul.f32 -1.442695, %v1580_v0 }
 0x103   :  { %v1378_v12 = vmul.f32 -1.442695, %v1581_v6 }
 0x104   :  { %1617 = vpow2.f32 %v1377_v2 }
 0x105   :  { %1619 = vtanh.f32 %v1581_v6 }
 0x10e   :  { %v1618_v7 = vpop.eup %1617 }
 0x10f   :  { %v313_v8 = vadd.f32 1.0, %v1618_v7  ;;  %v1620_v9 = vpop.eup %1619 }
 0x111   :  { %1621 = vrcp.f32 %v313_v8 }
 0x112   :  { %1623 = vpow2.f32 %v1378_v12 }
 0x11b   :  { %v1622_v10 = vpop.eup %1621 }
 0x11c   :  { %v329_v11 = vmul.f32 %v1622_v10, %v1620_v9  ;;  %v1624_v13 = vpop.eup %1623  ;;  %v328_v17 = vmul.f32 %v1622_v10, %v326_v14 }
 0x11d   :  { %v320_v15 = vadd.f32 1.0, %v1624_v13 }
 0x11e   :  { %331 = vrot.lane.b32.xlu0 %v329_v11, %s1715_s20 }
 0x11f   :  { %1625 = vrcp.f32 %v320_v15 }
 0x129   :  { %v1626_v21 = vpop.eup %1625 }
 0x190   :  { %v332_v18 = vpop.permute.xlu0 %331 }
 0x191   :  { %v334_v20 = vadd.f32 %v332_v18, %v328_v17 }
 0x193   :  { %1627 = vtanh.f32 %v334_v20 }
 0x19d   :  { %v1628_v23 = vpop.eup %1627 }
 0x19e   :  { %v336_v24 = vmul.f32 %v1628_v23, %v1626_v21 }
 0x1a0   :  { %343 = vrot.lane.b32.xlu1 %v336_v24, %s1715_s20 }
 0x1a4   :  { %338 = vrot.lane.b32.xlu1 %v334_v20, %s1715_s20 }
 0x212   :  { %v344_v25 = vpop.permute.xlu1 %343 }
 0x213   :  { %346 = vst.msk [vmem:[#allocation3] sm:$0xff] %vm212_vm1, %v344_v25 }
 0x216   :  { %v339_v27 = vpop.permute.xlu1 %338 }
 0x217   :  { %341 = vst.msk [vmem:[#allocation4] sm:$0xff] %vm212_vm1, %v339_v27 }
 0x21a   :  { %v349_v28 = vld [vmem:[#allocation3] sm:$0xff] }
 0x21b   :  { %1379 = vmatmul.mubr.msk.f32.vlgmr.msra.gmra.mrb[2].mxu1 %vm212_vm1, %v349_v28 }
 0x21c   :  { %1475 = vmatpush1.bf16.msra.mxu1 %v1804_v19  ;;  %565 = vmatprep.mubr.f32.mxu1 %v1713_v3 }
 0x21d   :  { %1477 = vmatprep.subr.bf16.mxu1 %v1812_v22 }
 0x21e   :  { %v455_v29 = vld [vmem:[#allocation4] sm:$0xff] }
 0x21f   :  { %457 = vrot.lane.b32.xlu0 %v455_v29, %s1715_s20 }
 0x220   :  { %1479 = vmatpush1.bf16.msra.mxu1 %v1829_v26 }
 0x221   :  { %1481 = vmatprep.subr.bf16.mxu1 %v1850_v33 }
 0x224   :  { %1483 = vmatpush1.bf16.msra.mxu1 %v1859_v36 }
 0x225   :  { %1485 = vmatprep.subr.bf16.mxu1 %v1870_v39 }
 0x228   :  { %1487 = vmatpush1.bf16.msra.mxu1 %v1879_v41 }
 0x291   :  { %v458_v46 = vpop.permute.xlu0 %457 }
 0x2ee   :  { %v435_v30 = vpop.f32.mrb[2].mxu1 }
 0x2ef   :  { %v1582_v31 = vadd.f32 %v435_v30, %v1948_v62  ;;  %v437_v32 = vpop.f32.mrb[3].mxu1 }
 0x2f0   :  { %v1583_v35 = vadd.f32 %v437_v32, %v1951_v5 }
 0x2f1   :  { %v1380_v34 = vmul.f32 -1.442695, %v1582_v31 }
 0x2f2   :  { %v1381_v44 = vmul.f32 -1.442695, %v1583_v35 }
 0x2f3   :  { %1629 = vpow2.f32 %v1380_v34 }
 0x2f4   :  { %1631 = vtanh.f32 %v1583_v35 }
 0x2fd   :  { %v1630_v37 = vpop.eup %1629 }
 0x2fe   :  { %v445_v38 = vadd.f32 1.0, %v1630_v37  ;;  %v1632_v40 = vpop.eup %1631  ;;  %v168_v37 = vadd.f32 %v1925_v48, %v1948_v62 }
 0x300   :  { %1633 = vrcp.f32 %v445_v38  ;;  %v170_v38 = vadd.f32 %v1927_v49, %v1951_v5 }
 0x301   :  { %1635 = vpow2.f32 %v1381_v44 }
 0x30a   :  { %v1634_v42 = vpop.eup %1633 }
 0x30b   :  { %v461_v43 = vmul.f32 %v1634_v42, %v1632_v40  ;;  %v1636_v45 = vpop.eup %1635  ;;  %v460_v52 = vmul.f32 %v1634_v42, %v458_v46 }
 0x30c   :  { %v452_v47 = vadd.f32 1.0, %v1636_v45 }
 0x30d   :  { %463 = vrot.lane.b32.xlu1 %v461_v43, %s1715_s20 }
 0x30e   :  { %1637 = vrcp.f32 %v452_v47 }
 0x318   :  { %v1638_v59 = vpop.eup %1637 }
 0x37f   :  { %v464_v55 = vpop.permute.xlu1 %463 }
 0x380   :  { %v466_v58 = vadd.f32 %v464_v55, %v460_v52 }
 0x382   :  { %1639 = vtanh.f32 %v466_v58  ;;  %470 = vrot.lane.b32.xlu1 %v466_v58, %s1715_s20 }
 0x38c   :  { %v1640_v63 = vpop.eup %1639 }
 0x38d   :  { %v468_v0 = vmul.f32 %v1640_v63, %v1638_v59 }
 0x38f   :  { %475 = vrot.lane.b32.xlu0 %v468_v0, %s1715_s20 }
 0x3f4   :  { %v471_v1 = vpop.permute.xlu1 %470 }
 0x3f5   :  { %473 = vst.msk [vmem:[#allocation4] sm:$0xff] %vm212_vm1, %v471_v1 }
 0x3fc   :  { %v587_v2 = vld [vmem:[#allocation4] sm:$0xff] }
 0x3fd   :  { %589 = vrot.lane.b32.xlu0 %v587_v2, %s1715_s20 }
 0x401   :  { %v476_v4 = vpop.permute.xlu0 %475 }
 0x402   :  { %478 = vst.msk [vmem:[#allocation3] sm:$0xff] %vm212_vm1, %v476_v4 }
 0x409   :  { %v481_v6 = vld [vmem:[#allocation3] sm:$0xff] }
 0x40a   :  { %1382 = vmatmul.mubr.msk.f32.vlgmr.msra.gmra.mrb[4].mxu1 %vm212_vm1, %v481_v6 }
 0x40b   :  { %1427 = vmatprep.mubr.msk.f32.mxu1 %vm1717_vm5, %v1713_v3 }
 0x46f   :  { %v590_v21 = vpop.permute.xlu0 %589 }
 0x4dd   :  { %v567_v7 = vpop.f32.mrb[4].mxu1 }
 0x4de   :  { %v1584_v8 = vadd.f32 %v567_v7, %v1948_v62  ;;  %v569_v9 = vpop.f32.mrb[5].mxu1 }
 0x4df   :  { %v1585_v11 = vadd.f32 %v569_v9, %v1951_v5 }
 0x4e0   :  { %v1383_v10 = vmul.f32 -1.442695, %v1584_v8 }
 0x4e1   :  { %v1384_v18 = vmul.f32 -1.442695, %v1585_v11 }
 0x4e2   :  { %1641 = vpow2.f32 %v1383_v10 }
 0x4e3   :  { %1643 = vtanh.f32 %v1585_v11 }
 0x4ec   :  { %v1642_v12 = vpop.eup %1641 }
 0x4ed   :  { %v577_v13 = vadd.f32 1.0, %v1642_v12  ;;  %v1644_v14 = vpop.eup %1643  ;;  %v174_v12 = vadd.f32 %v1929_v50, %v1948_v62 }
 0x4ef   :  { %1645 = vrcp.f32 %v577_v13  ;;  %v176_v13 = vadd.f32 %v1931_v51, %v1951_v5 }
 0x4f0   :  { %1647 = vpow2.f32 %v1384_v18 }
 0x4f9   :  { %v1646_v15 = vpop.eup %1645 }
 0x4fa   :  { %v593_v17 = vmul.f32 %v1646_v15, %v1644_v14  ;;  %v1648_v20 = vpop.eup %1647  ;;  %v592_v24 = vmul.f32 %v1646_v15, %v590_v21 }
 0x4fb   :  { %v584_v23 = vadd.f32 1.0, %v1648_v20 }
 0x4fc   :  { %595 = vrot.lane.b32.xlu1 %v593_v17, %s1715_s20 }
 0x4fd   :  { %1649 = vrcp.f32 %v584_v23 }
 0x507   :  { %v1650_v28 = vpop.eup %1649 }
 0x56e   :  { %v596_v25 = vpop.permute.xlu1 %595 }
 0x56f   :  { %v598_v27 = vadd.f32 %v596_v25, %v592_v24 }
 0x571   :  { %1651 = vtanh.f32 %v598_v27  ;;  %602 = vrot.lane.b32.xlu1 %v598_v27, %s1715_s20 }
 0x57b   :  { %v1652_v29 = vpop.eup %1651 }
 0x57c   :  { %v600_v30 = vmul.f32 %v1652_v29, %v1650_v28 }
 0x57e   :  { %607 = vrot.lane.b32.xlu0 %v600_v30, %s1715_s20 }
 0x5e3   :  { %v603_v31 = vpop.permute.xlu1 %602 }
 0x5e4   :  { %605 = vst.msk [vmem:[#allocation4] sm:$0xff] %vm212_vm1, %v603_v31 }
 0x5eb   :  { %v719_v32 = vld [vmem:[#allocation4] sm:$0xff] }
 0x5ec   :  { %721 = vrot.lane.b32.xlu0 %v719_v32, %s1715_s20 }
 0x5f0   :  { %v608_v34 = vpop.permute.xlu0 %607 }
 0x5f1   :  { %610 = vst.msk [vmem:[#allocation3] sm:$0xff] %vm212_vm1, %v608_v34 }
 0x5f8   :  { %v613_v35 = vld [vmem:[#allocation3] sm:$0xff] }
 0x5f9   :  { %1385 = vmatmul.mubr.msk.f32.vlgmr.msra.gmra.mrb[0].mxu0 %vm212_vm1, %v613_v35 }
 0x5fa   :  { %1507 = vmatpush1.bf16.msra.mxu0 %v1804_v19  ;;  %829 = vmatprep.mubr.f32.mxu0 %v1713_v3 }
 0x5fb   :  { %1509 = vmatprep.subr.bf16.mxu0 %v1812_v22 }
 0x5fe   :  { %1511 = vmatpush1.bf16.msra.mxu0 %v1829_v26 }
 0x5ff   :  { %1513 = vmatprep.subr.bf16.mxu0 %v1850_v33 }
 0x602   :  { %1515 = vmatpush1.bf16.msra.mxu0 %v1859_v36 }
 0x603   :  { %1517 = vmatprep.subr.bf16.mxu0 %v1870_v39 }
 0x606   :  { %1519 = vmatpush1.bf16.msra.mxu0 %v1879_v41 }
 0x607   :  { %1521 = vmatprep.subr.bf16.mxu0 %v1794_v16 }
 0x65e   :  { %v722_v63 = vpop.permute.xlu0 %721 }
 0x6cc   :  { %v699_v40 = vpop.f32.mrb[0].mxu0 }
 0x6cd   :  { %v704_v42 = vadd.f32 %v699_v40, %v168_v37  ;;  %v701_v43 = vpop.f32.mrb[1].mxu0 }
 0x6ce   :  { %v705_v44 = vadd.f32 %v701_v43, %v170_v38 }
 0x6cf   :  { %v1386_v45 = vmul.f32 -1.442695, %v704_v42 }
 0x6d0   :  { %v1387_v59 = vmul.f32 -1.442695, %v705_v44 }
 0x6d1   :  { %1653 = vpow2.f32 %v1386_v45  ;;  %v182_v45 = vadd.f32 %v1935_v54, %v1951_v5 }
 0x6d2   :  { %1655 = vtanh.f32 %v705_v44  ;;  %v180_v44 = vadd.f32 %v1933_v53, %v1948_v62 }
 0x6db   :  { %v1654_v46 = vpop.eup %1653 }
 0x6dc   :  { %v709_v47 = vadd.f32 1.0, %v1654_v46  ;;  %v1656_v52 = vpop.eup %1655 }
 0x6de   :  { %1657 = vrcp.f32 %v709_v47 }
 0x6df   :  { %1659 = vpow2.f32 %v1387_v59 }
 0x6e8   :  { %v1658_v55 = vpop.eup %1657 }
 0x6e9   :  { %v725_v58 = vmul.f32 %v1658_v55, %v1656_v52  ;;  %v1660_v48 = vpop.eup %1659  ;;  %v724_v0 = vmul.f32 %v1658_v55, %v722_v63 }
 0x6ea   :  { %v716_v49 = vadd.f32 1.0, %v1660_v48 }
 0x6eb   :  { %727 = vrot.lane.b32.xlu1 %v725_v58, %s1715_s20 }
 0x6ec   :  { %1661 = vrcp.f32 %v716_v49 }
 0x6f6   :  { %v1662_v4 = vpop.eup %1661 }
 0x75d   :  { %v728_v1 = vpop.permute.xlu1 %727 }
 0x75e   :  { %v730_v2 = vadd.f32 %v728_v1, %v724_v0 }
 0x760   :  { %1663 = vtanh.f32 %v730_v2  ;;  %734 = vrot.lane.b32.xlu1 %v730_v2, %s1715_s20 }
 0x76a   :  { %v1664_v6 = vpop.eup %1663 }
 0x76b   :  { %v732_v7 = vmul.f32 %v1664_v6, %v1662_v4 }
 0x76d   :  { %739 = vrot.lane.b32.xlu0 %v732_v7, %s1715_s20 }
 0x7d2   :  { %v735_v8 = vpop.permute.xlu1 %734 }
 0x7d3   :  { %737 = vst.msk [vmem:[#allocation4] sm:$0xff] %vm212_vm1, %v735_v8 }
 0x7da   :  { %v851_v9 = vld [vmem:[#allocation4] sm:$0xff] }
 0x7db   :  { %853 = vrot.lane.b32.xlu0 %v851_v9, %s1715_s20 }
 0x7df   :  { %v740_v10 = vpop.permute.xlu0 %739 }
 0x7e0   :  { %742 = vst.msk [vmem:[#allocation3] sm:$0xff] %vm212_vm1, %v740_v10 }
 0x7e7   :  { %v745_v11 = vld [vmem:[#allocation3] sm:$0xff] }
 0x7e8   :  { %1388 = vmatmul.mubr.msk.f32.vlgmr.msra.gmra.mrb[2].mxu0 %vm212_vm1, %v745_v11 }
 0x7e9   :  { %1523 = vmatpush1.bf16.msra.mxu0 %v1804_v19  ;;  %961 = vmatprep.mubr.f32.mxu0 %v1713_v3 }
 0x7ea   :  { %1525 = vmatprep.subr.bf16.mxu0 %v1812_v22 }
 0x7ed   :  { %1527 = vmatpush1.bf16.msra.mxu0 %v1829_v26 }
 0x7ee   :  { %1529 = vmatprep.subr.bf16.mxu0 %v1850_v33 }
 0x7f1   :  { %1531 = vmatpush1.bf16.msra.mxu0 %v1859_v36 }
 0x7f2   :  { %1533 = vmatprep.subr.bf16.mxu0 %v1870_v39 }
 0x7f5   :  { %1535 = vmatpush1.bf16.msra.mxu0 %v1879_v41 }
 0x7f6   :  { %1537 = vmatprep.subr.bf16.mxu0 %v1794_v16 }
 0x84d   :  { %v854_v29 = vpop.permute.xlu0 %853 }
 0x8bb   :  { %v831_v14 = vpop.f32.mrb[2].mxu0 }
 0x8bc   :  { %v836_v15 = vadd.f32 %v831_v14, %v174_v12  ;;  %v833_v17 = vpop.f32.mrb[3].mxu0  ;;  %v186_v14 = vadd.f32 %v1937_v56, %v1948_v62 }
 0x8bd   :  { %v837_v18 = vadd.f32 %v833_v17, %v176_v13 }
 0x8be   :  { %v1389_v20 = vmul.f32 -1.442695, %v836_v15 }
 0x8bf   :  { %v1390_v28 = vmul.f32 -1.442695, %v837_v18 }
 0x8c0   :  { %1665 = vpow2.f32 %v1389_v20 }
 0x8c1   :  { %1667 = vtanh.f32 %v837_v18 }
 0x8ca   :  { %v1666_v21 = vpop.eup %1665 }
 0x8cb   :  { %v841_v23 = vadd.f32 1.0, %v1666_v21  ;;  %v1668_v24 = vpop.eup %1667 }
 0x8cd   :  { %1669 = vrcp.f32 %v841_v23 }
 0x8ce   :  { %1671 = vpow2.f32 %v1390_v28 }
 0x8d7   :  { %v1670_v25 = vpop.eup %1669 }
 0x8d8   :  { %v857_v27 = vmul.f32 %v1670_v25, %v1668_v24  ;;  %v1672_v50 = vpop.eup %1671  ;;  %v856_v30 = vmul.f32 %v1670_v25, %v854_v29 }
 0x8d9   :  { %v848_v51 = vadd.f32 1.0, %v1672_v50 }
 0x8da   :  { %859 = vrot.lane.b32.xlu1 %v857_v27, %s1715_s20 }
 0x8db   :  { %1673 = vrcp.f32 %v848_v51 }
 0x8e5   :  { %v1674_v34 = vpop.eup %1673 }
 0x94c   :  { %v860_v31 = vpop.permute.xlu1 %859 }
 0x94d   :  { %v862_v32 = vadd.f32 %v860_v31, %v856_v30 }
 0x94f   :  { %1675 = vtanh.f32 %v862_v32  ;;  %866 = vrot.lane.b32.xlu1 %v862_v32, %s1715_s20 }
 0x959   :  { %v1676_v35 = vpop.eup %1675 }
 0x95a   :  { %v864_v37 = vmul.f32 %v1676_v35, %v1674_v34  ;;  %v192_v34 = vadd.f32 %v1944_v60, %v1948_v62  ;;  %v194_v35 = vadd.f32 %v1946_v61, %v1951_v5  ;;  %v1716_v60 = vmov 0.0|0.0   ;;  %v1272_v61 = vld [vmem:[%s2111_s4] sm:$0xff]  ;;  %v1273_v62 = vld [vmem:[%s2111_s4 + $0x8] sm:$0xff] }
 0x95b   :  { %1568 = vmatprep.subr.bf16.mxu1 %v1716_v60 }
 0x95c   :  { %871 = vrot.lane.b32.xlu0 %v864_v37, %s1715_s20 }
 0x9c1   :  { %v867_v38 = vpop.permute.xlu1 %866 }
 0x9c2   :  { %869 = vst.msk [vmem:[#allocation4] sm:$0xff] %vm212_vm1, %v867_v38 }
 0x9c9   :  { %v983_v40 = vld [vmem:[#allocation4] sm:$0xff] }
 0x9ca   :  { %985 = vrot.lane.b32.xlu0 %v983_v40, %s1715_s20 }
 0x9ce   :  { %v872_v42 = vpop.permute.xlu0 %871 }
 0x9cf   :  { %874 = vst.msk [vmem:[#allocation3] sm:$0xff] %vm212_vm1, %v872_v42 }
 0x9d6   :  { %v877_v43 = vld [vmem:[#allocation3] sm:$0xff] }
 0x9d7   :  { %1391 = vmatmul.mubr.msk.f32.vlgmr.msra.gmra.mrb[4].mxu0 %vm212_vm1, %v877_v43 }
 0x9d8   :  { %1539 = vmatpush1.bf16.msra.mxu0 %v1804_v19  ;;  %1093 = vmatprep.mubr.f32.mxu0 %v1713_v3 }
 0x9d9   :  { %1541 = vmatprep.subr.bf16.mxu0 %v1812_v22 }
 0x9dc   :  { %1543 = vmatpush1.bf16.msra.mxu0 %v1829_v26 }
 0x9dd   :  { %1545 = vmatprep.subr.bf16.mxu0 %v1850_v33 }
 0x9e0   :  { %1547 = vmatpush1.bf16.msra.mxu0 %v1859_v36 }
 0x9e1   :  { %1549 = vmatprep.subr.bf16.mxu0 %v1870_v39 }
 0x9e4   :  { %1551 = vmatpush1.bf16.msra.mxu0 %v1879_v41 }
 0x9e5   :  { %1553 = vmatprep.subr.bf16.mxu0 %v1794_v16 }
 0xa3c   :  { %v986_v1 = vpop.permute.xlu0 %985 }
 0xaaa   :  { %v963_v46 = vpop.f32.mrb[4].mxu0 }
 0xaab   :  { %v968_v47 = vadd.f32 %v963_v46, %v180_v44  ;;  %v965_v52 = vpop.f32.mrb[5].mxu0 }
 0xaac   :  { %v969_v55 = vadd.f32 %v965_v52, %v182_v45 }
 0xaad   :  { %v1392_v58 = vmul.f32 -1.442695, %v968_v47 }
 0xaae   :  { %v1393_v16 = vmul.f32 -1.442695, %v969_v55 }
 0xaaf   :  { %1677 = vpow2.f32 %v1392_v58  ;;  %v1569_v58 = vpack.c.bf16 %v1273_v62, %v1272_v61 }
 0xab0   :  { %1679 = vtanh.f32 %v969_v55 }
 0xab1   :  { %1570 = vmatpush3.bf16.msra.mxu1 %v1569_v58 }
 0xab2   :  { %1571 = vmatprep.subr.bf16.mxu1 %v1716_v60 }
 0xab9   :  { %v1678_v59 = vpop.eup %1677 }
 0xaba   :  { %v973_v48 = vadd.f32 1.0, %v1678_v59  ;;  %v1680_v63 = vpop.eup %1679  ;;  %v1275_v59 = vld [vmem:[%s2111_s4 + $0x18] sm:$0xff] }
 0xabc   :  { %1681 = vrcp.f32 %v973_v48 }
 0xabd   :  { %1683 = vpow2.f32 %v1393_v16 }
 0xac6   :  { %v1682_v49 = vpop.eup %1681 }
 0xac7   :  { %v989_v0 = vmul.f32 %v1682_v49, %v1680_v63  ;;  %v1684_v53 = vpop.eup %1683  ;;  %v988_v2 = vmul.f32 %v1682_v49, %v986_v1 }
 0xac8   :  { %v980_v54 = vadd.f32 1.0, %v1684_v53 }
 0xac9   :  { %991 = vrot.lane.b32.xlu1 %v989_v0, %s1715_s20 }
 0xaca   :  { %1685 = vrcp.f32 %v980_v54  ;;  %v1276_v54 = vld [vmem:[%s2111_s4 + $0x20] sm:$0xff] }
 0xad4   :  { %v1686_v7 = vpop.eup %1685 }
 0xb3b   :  { %v992_v4 = vpop.permute.xlu1 %991 }
 0xb3c   :  { %v994_v6 = vadd.f32 %v992_v4, %v988_v2  ;;  %v1277_v2 = vld [vmem:[%s2111_s4 + $0x28] sm:$0xff] }
 0xb3d   :  { %v1575_v4 = vpack.c.bf16 %v1277_v2, %v1276_v54 }
 0xb3e   :  { %1687 = vtanh.f32 %v994_v6  ;;  %998 = vrot.lane.b32.xlu1 %v994_v6, %s1715_s20  ;;  %v1278_v6 = vld [vmem:[%s2111_s4 + $0x30] sm:$0xff] }
 0xb48   :  { %v1688_v8 = vpop.eup %1687 }
 0xb49   :  { %v996_v9 = vmul.f32 %v1688_v8, %v1686_v7  ;;  %v1279_v7 = vld [vmem:[%s2111_s4 + $0x38] sm:$0xff] }
 0xb4a   :  { %v1578_v8 = vpack.c.bf16 %v1279_v7, %v1278_v6 }
 0xb4b   :  { %1003 = vrot.lane.b32.xlu0 %v996_v9, %s1715_s20 }
 0xbb0   :  { %v999_v10 = vpop.permute.xlu1 %998 }
 0xbb1   :  { %1001 = vst.msk [vmem:[#allocation4] sm:$0xff] %vm212_vm1, %v999_v10 }
 0xbb8   :  { %v1115_v11 = vld [vmem:[#allocation4] sm:$0xff] }
 0xbb9   :  { %1117 = vrot.lane.b32.xlu0 %v1115_v11, %s1715_s20 }
 0xbbd   :  { %v1004_v12 = vpop.permute.xlu0 %1003 }
 0xbbe   :  { %1006 = vst.msk [vmem:[#allocation3] sm:$0xff] %vm212_vm1, %v1004_v12 }
 0xbc5   :  { %v1009_v13 = vld [vmem:[#allocation3] sm:$0xff] }
 0xbc6   :  { %1394 = vmatmul.mubr.msk.f32.vlgmr.msra.gmra.mrb[6].mxu0 %vm212_vm1, %v1009_v13 }
 0xbc7   :  { %1555 = vmatpush1.bf16.msra.mxu0 %v1804_v19  ;;  %1225 = vmatprep.mubr.f32.mxu0 %v1713_v3  ;;  %v188_v19 = vadd.f32 %v1939_v57, %v1951_v5  ;;  %v1274_v5 = vld [vmem:[%s2111_s4 + $0x10] sm:$0xff]  ;;  %v1400_v3 = vld [vmem:[%s2112_s5] ss:$0 sm:$0xff] }
 0xbc8   :  { %1557 = vmatprep.subr.bf16.mxu0 %v1812_v22  ;;  %v1572_v48 = vpack.c.bf16 %v1275_v59, %v1274_v5 }
 0xbca   :  { %1573 = vmatpush3.bf16.msra.mxu1 %v1572_v48 }
 0xbcb   :  { %1559 = vmatpush1.bf16.msra.mxu0 %v1829_v26  ;;  %1574 = vmatprep.subr.bf16.mxu1 %v1716_v60 }
 0xbcc   :  { %1561 = vmatprep.subr.bf16.mxu0 %v1850_v33 }
 0xbce   :  { %1576 = vmatpush3.bf16.msra.mxu1 %v1575_v4 }
 0xbcf   :  { %1563 = vmatpush1.bf16.msra.mxu0 %v1859_v36  ;;  %1577 = vmatprep.subr.bf16.mxu1 %v1716_v60 }
 0xbd0   :  { %1565 = vmatprep.subr.bf16.mxu0 %v1870_v39 }
 0xbd2   :  { %1579 = vmatpush3.bf16.msra.mxu1 %v1578_v8 }
 0xbd3   :  { %1567 = vmatpush1.bf16.msra.mxu0 %v1879_v41 }
 0xc2b   :  { %v1118_v23 = vpop.permute.xlu0 %1117 }
 0xc99   :  { %v1095_v15 = vpop.f32.mrb[6].mxu0 }
 0xc9a   :  { %v1100_v17 = vadd.f32 %v1095_v15, %v186_v14  ;;  %v1097_v18 = vpop.f32.mrb[7].mxu0 }
 0xc9b   :  { %v1101_v22 = vadd.f32 %v1097_v18, %v188_v19 }
 0xc9c   :  { %v1395_v20 = vmul.f32 -1.442695, %v1100_v17 }
 0xc9d   :  { %v1396_v41 = vmul.f32 -1.442695, %v1101_v22 }
 0xc9e   :  { %1689 = vpow2.f32 %v1395_v20 }
 0xc9f   :  { %1691 = vtanh.f32 %v1101_v22 }
 0xca8   :  { %v1690_v26 = vpop.eup %1689 }
 0xca9   :  { %v1105_v33 = vadd.f32 1.0, %v1690_v26  ;;  %v1692_v36 = vpop.eup %1691 }
 0xcab   :  { %1693 = vrcp.f32 %v1105_v33 }
 0xcac   :  { %1695 = vpow2.f32 %v1396_v41 }
 0xcb5   :  { %v1694_v39 = vpop.eup %1693 }
 0xcb6   :  { %v1121_v21 = vmul.f32 %v1694_v39, %v1692_v36  ;;  %v1696_v56 = vpop.eup %1695  ;;  %v1120_v24 = vmul.f32 %v1694_v39, %v1118_v23 }
 0xcb7   :  { %v1112_v57 = vadd.f32 1.0, %v1696_v56 }
 0xcb8   :  { %1123 = vrot.lane.b32.xlu1 %v1121_v21, %s1715_s20 }
 0xcb9   :  { %1697 = vrcp.f32 %v1112_v57 }
 0xcc3   :  { %v1698_v28 = vpop.eup %1697 }
 0xd2a   :  { %v1124_v25 = vpop.permute.xlu1 %1123 }
 0xd2b   :  { %v1126_v27 = vadd.f32 %v1124_v25, %v1120_v24 }
 0xd2d   :  { %1699 = vtanh.f32 %v1126_v27  ;;  %1130 = vrot.lane.b32.xlu1 %v1126_v27, %s1715_s20 }
 0xd37   :  { %v1700_v50 = vpop.eup %1699 }
 0xd38   :  { %v1128_v29 = vmul.f32 %v1700_v50, %v1698_v28 }
 0xd3a   :  { %1135 = vrot.lane.b32.xlu0 %v1128_v29, %s1715_s20 }
 0xd9f   :  { %v1131_v51 = vpop.permute.xlu1 %1130 }
 0xda0   :  { %1133 = vst.msk [vmem:[#allocation4] sm:$0xff] %vm212_vm1, %v1131_v51 }
 0xda7   :  { %v1247_v30 = vld [vmem:[#allocation4] sm:$0xff] }
 0xda8   :  { %1249 = vrot.lane.b32.xlu0 %v1247_v30, %s1715_s20 }
 0xdac   :  { %v1136_v31 = vpop.permute.xlu0 %1135 }
 0xdad   :  { %1138 = vst.msk [vmem:[#allocation3] sm:$0xff] %vm212_vm1, %v1136_v31 }
 0xdb4   :  { %v1141_v32 = vld [vmem:[#allocation3] sm:$0xff] }
 0xdb5   :  { %1397 = vmatmul.mubr.msk.f32.vlgmr.msra.gmra.mrb[8].mxu0 %vm212_vm1, %v1141_v32 }
 0xe1a   :  { %v1250_v49 = vpop.permute.xlu0 %1249 }
 0xe88   :  { %v1227_v37 = vpop.f32.mrb[8].mxu0 }
 0xe89   :  { %v1232_v38 = vadd.f32 %v1227_v37, %v192_v34  ;;  %v1229_v40 = vpop.f32.mrb[9].mxu0 }
 0xe8a   :  { %v1233_v42 = vadd.f32 %v1229_v40, %v194_v35 }
 0xe8b   :  { %v1398_v43 = vmul.f32 -1.442695, %v1232_v38 }
 0xe8c   :  { %v1399_v55 = vmul.f32 -1.442695, %v1233_v42 }
 0xe8d   :  { %1701 = vpow2.f32 %v1398_v43 }
 0xe8e   :  { %1703 = vtanh.f32 %v1233_v42 }
 0xe97   :  { %v1702_v44 = vpop.eup %1701 }
 0xe98   :  { %v1237_v45 = vadd.f32 1.0, %v1702_v44  ;;  %v1704_v46 = vpop.eup %1703 }
 0xe9a   :  { %1705 = vrcp.f32 %v1237_v45 }
 0xe9b   :  { %1707 = vpow2.f32 %v1399_v55 }
 0xea4   :  { %v1706_v47 = vpop.eup %1705 }
 0xea5   :  { %v1253_v52 = vmul.f32 %v1706_v47, %v1704_v46  ;;  %v1708_v63 = vpop.eup %1707  ;;  %v1252_v16 = vmul.f32 %v1706_v47, %v1250_v49 }
 0xea6   :  { %v1244_v0 = vadd.f32 1.0, %v1708_v63 }
 0xea7   :  { %1255 = vrot.lane.b32.xlu1 %v1253_v52, %s1715_s20 }
 0xea8   :  { %1709 = vrcp.f32 %v1244_v0 }
 0xeb2   :  { %v1710_v9 = vpop.eup %1709 }
 0xf19   :  { %v1256_v53 = vpop.permute.xlu1 %1255 }
 0xf1a   :  { %v1258_v1 = vadd.f32 %v1256_v53, %v1252_v16 }
 0xf1c   :  { %1711 = vtanh.f32 %v1258_v1  ;;  %1262 = vrot.lane.b32.xlu1 %v1258_v1, %s1715_s20 }
 0xf26   :  { %v1712_v10 = vpop.eup %1711 }
 0xf27   :  { %v1260_v11 = vmul.f32 %v1712_v10, %v1710_v9 }
 0xf29   :  { %1267 = vrot.lane.b32.xlu0 %v1260_v11, %s1715_s20 }
 0xf8e   :  { %v1263_v12 = vpop.permute.xlu1 %1262 }
 0xf8f   :  { %1265 = vst.msk [vmem:[#allocation4] sm:$0xff] %vm212_vm1, %v1263_v12 }
 0xf9b   :  { %v1268_v13 = vpop.permute.xlu0 %1267 }
 0xf9c   :  { %1270 = vst.msk [vmem:[#allocation3] sm:$0xff] %vm212_vm1, %v1268_v13 }
 0xfa3   :  { %v1271_v14 = vld [vmem:[#allocation3] sm:$0xff] }
 0xfa4   :  { %1428 = vmatmul.mubr.msk.f32.vlgmr.msra.gmra.mrb[16].mxu1 %vm212_vm1, %v1271_v14 }
0x1077   :  { %v1356_v19 = vpop.f32.mrb[16].mxu1 }
0x1078   :  { %v1357_v15 = vadd.f32 %v1400_v3, %v1356_v19  ;;  %v1429_v17 = vpop.f32.mrb[17].mxu1 }
0x107a   :  { %1361 = vst.msk [vmem:[%s2113_s6] sm:$0xff] %vm1360_vm6, %v1357_v15 }

</bundles_post_ra>
